<compile_context>
chip_gen: v7x
topology: tpu7x:2x2x1
jax: 0.10.0
libtpu: 0.0.40
codegen_flags: <defaults>
</compile_context>

<pallas_src>
import jax
import jax.numpy as jnp
from jax.experimental import pallas as pl
from jax.experimental.pallas import tpu as pltpu


# ----------------------------------------------------------------------------
# Fused kernel: [fc01|fc02] -> ReLU -> fc11/fc12/fc13 (+ReLU) -> 3 cls heads
# -> lane-packed scores + 2-class argmax.  Gridless: one step, all in VMEM.
# ----------------------------------------------------------------------------
def _fc_fused_kernel(x_ref, w_in_ref, b_in_ref,
                     w11_ref, b11_ref, w12_ref, b12_ref, w13_ref, b13_ref,
                     wc1_ref, wc2_ref, wc3_ref, bc_ref,
                     scores_ref, preds_ref):
    x = x_ref[...]                                              # (B, 3*m*n)

    def dense(v, w_ref, b_ref):
        y = jnp.dot(v, w_ref[...], preferred_element_type=jnp.float32) + b_ref[...]
        return jnp.maximum(y, 0.0)

    # cat(relu(fc01(x_topo)), relu(fc02(x_single))) == relu(x_flat @ w_in + b_in)
    h = dense(x, w_in_ref, b_in_ref)                            # (B, 32)
    # TODO(synk): Dropout(p=0.6) is a no-op in eval mode; training-mode masking
    # is not implemented here.
    y1 = dense(h, w11_ref, b11_ref)                             # (B, 64)
    y2 = dense(y1, w12_ref, b12_ref)                            # (B, 32)
    y3 = dense(y2, w13_ref, b13_ref)                            # (B, 32)

    # All three classifier heads at once, lane-packed in the column order
    # [z3_c0, z2_c0, z1_c0, z3_c1, z2_c1, z1_c1]  (== scores.reshape(B, 6)).
    z = (jnp.dot(y1, wc1_ref[...], preferred_element_type=jnp.float32)
         + jnp.dot(y2, wc2_ref[...], preferred_element_type=jnp.float32)
         + jnp.dot(y3, wc3_ref[...], preferred_element_type=jnp.float32)
         + bc_ref[...])                                         # (B, 6)
    scores_ref[...] = z
    # 2-class argmax: index 1 iff class-1 score strictly greater (matches
    # torch/jnp first-max-on-tie semantics).  Column pairs are (k, k+3).
    preds_ref[...] = (z[:, 3:6] > z[:, 0:3]).astype(jnp.int32)  # (B, 3)


# ----------------------------------------------------------------------------
# Wrapper
# ----------------------------------------------------------------------------
def fc_forward(x, params):
    """x: (B, layer_n, n) with layer_n == 3*m.

    Returns (scores (B, 2, 3) f32, preds (B, 3) i32), matching
    [stack((y3, y2, y1), 1).transpose(1, 2), stack((p3, p2, p1), 1)].
    """
    B, layer_n, n = x.shape
    x_flat = x.reshape(B, layer_n * n)   # free row-major reshape (no gather)
    args = (x_flat, params["w_in"], params["b_in"],
            params["w11"], params["b11"], params["w12"], params["b12"],
            params["w13"], params["b13"],
            params["wc1"], params["wc2"], params["wc3"], params["bc"])
    scores_packed, preds = pl.pallas_call(
        _fc_fused_kernel,
        out_shape=(jax.ShapeDtypeStruct((B, 6), jnp.float32),
                   jax.ShapeDtypeStruct((B, 3), jnp.int32)),
        in_specs=[pl.BlockSpec(memory_space=pltpu.MemorySpace.VMEM) for _ in args],
        out_specs=(pl.BlockSpec(memory_space=pltpu.MemorySpace.VMEM),
                   pl.BlockSpec(memory_space=pltpu.MemorySpace.VMEM)),
    )(*args)
    # (B, 6) -> (B, 2, 3) is a free metadata reshape; column order was chosen
    # so this equals stack((y3, y2, y1), 1).transpose(1, 2).
    return scores_packed.reshape(B, 2, 3), preds


# ----------------------------------------------------------------------------
# Parameters: deterministic synthetic init (PyTorch layout folded/packed).
# ----------------------------------------------------------------------------
def init_raw_params(key, m, n, scale=0.1):
    dims = {
        "fc01": (m * n, 16), "fc02": (2 * m * n, 16),
        "fc11": (32, 64), "fc12": (64, 32), "fc13": (32, 32),
        "cls1": (64, 2), "cls2": (32, 2), "cls3": (32, 2),
    }
    raw = {}
    keys = jax.random.split(key, len(dims))
    for k, (name, (fin, fout)) in zip(keys, dims.items()):
        kw, kb = jax.random.split(k)
        raw[name] = (jax.random.normal(kw, (fin, fout), jnp.float32) * scale,
                     jax.random.normal(kb, (fout,), jnp.float32) * scale)
    return raw


def pack_params(raw, m, n):
    layer_n = 3 * m
    w01, b01 = raw["fc01"]
    w02, b02 = raw["fc02"]
    w11, b11 = raw["fc11"]
    w12, b12 = raw["fc12"]
    w13, b13 = raw["fc13"]
    wc1, bc1 = raw["cls1"]
    wc2, bc2 = raw["cls2"]
    wc3, bc3 = raw["cls3"]

    # Fold the topo/single row selection into the first-layer weight:
    # flattened-x row (layer*n + col) gets fc01's row if layer % 3 == 0
    # (columns 0:16) else fc02's row (columns 16:32).
    topo = jnp.arange(0, layer_n, 3, dtype=jnp.int32)
    single = jnp.asarray([i for i in range(layer_n) if i % 3 != 0], jnp.int32)
    col = jnp.arange(n, dtype=jnp.int32)
    topo_rows = (topo[:, None] * n + col[None, :]).reshape(-1)      # (m*n,)
    single_rows = (single[:, None] * n + col[None, :]).reshape(-1)  # (2*m*n,)
    w_in = jnp.zeros((layer_n * n, 32), jnp.float32)
    w_in = w_in.at[topo_rows].set(jnp.pad(w01, ((0, 0), (0, 16))))
    w_in = w_in.at[single_rows].set(jnp.pad(w02, ((0, 0), (16, 0))))
    b_in = jnp.concatenate([b01, b02])[None, :]                     # (1, 32)

    # Pack the 3 heads, column-permuted so the kernel's (B, 6) output equals
    # stack((y3, y2, y1), 1).transpose(1, 2).reshape(B, 6):
    # column c*3 + k  <-  class c of head k (k: 0 -> cls3, 1 -> cls2, 2 -> cls1).
    def place_head(w, b, slot):
        fin = w.shape[0]
        wp = jnp.zeros((fin, 6), jnp.float32)
        wp = wp.at[:, slot].set(w[:, 0]).at[:, slot + 3].set(w[:, 1])
        bp = jnp.zeros((6,), jnp.float32).at[slot].set(b[0]).at[slot + 3].set(b[1])
        return wp, bp

    wc1p, bc1p = place_head(wc1, bc1, 2)   # cls1(y1) -> slot 2
    wc2p, bc2p = place_head(wc2, bc2, 1)   # cls2(y2) -> slot 1
    wc3p, bc3p = place_head(wc3, bc3, 0)   # cls3(y3) -> slot 0

    return {
        "w_in": w_in, "b_in": b_in,
        "w11": w11, "b11": b11[None, :],
        "w12": w12, "b12": b12[None, :],
        "w13": w13, "b13": b13[None, :],
        "wc1": wc1p, "wc2": wc2p, "wc3": wc3p,
        "bc": (bc1p + bc2p + bc3p)[None, :],
    }


# ----------------------------------------------------------------------------
# Pure-JAX reference of the PyTorch FC.forward (eval mode) for validation.
# ----------------------------------------------------------------------------
def fc_forward_ref(x, raw):
    B, layer_n, _ = x.shape
    topo = list(range(0, layer_n, 3))
    single = [i for i in range(layer_n) if i not in topo]
    x1 = x[:, topo, :].reshape(B, -1)
    x2 = x[:, single, :].reshape(B, -1)
    relu = jax.nn.relu
    w01, b01 = raw["fc01"]; w02, b02 = raw["fc02"]
    w11, b11 = raw["fc11"]; w12, b12 = raw["fc12"]; w13, b13 = raw["fc13"]
    wc1, bc1 = raw["cls1"]; wc2, bc2 = raw["cls2"]; wc3, bc3 = raw["cls3"]
    h = jnp.concatenate([relu(x1 @ w01 + b01), relu(x2 @ w02 + b02)], axis=1)
    y1 = relu(h @ w11 + b11)
    y2 = relu(y1 @ w12 + b12)
    y3 = relu(y2 @ w13 + b13)
    z1 = y1 @ wc1 + bc1
    z2 = y2 @ wc2 + bc2
    z3 = y3 @ wc3 + bc3
    scores = jnp.stack([z3, z2, z1], axis=1).transpose(0, 2, 1)       # (B, 2, 3)
    preds = jnp.stack([jnp.argmax(z3, axis=1), jnp.argmax(z2, axis=1),
                       jnp.argmax(z1, axis=1)], axis=1).astype(jnp.int32)
    return scores, preds


if __name__ == "__main__":
    m, n, B = 4, 8, 2                 # arch = (4, 8)  ->  x: (B, 3*m, n) = (2, 12, 8)
    key = jax.random.PRNGKey(0)
    kx, kp = jax.random.split(key)
    x = jax.random.normal(kx, (B, 3 * m, n), jnp.float32)

    raw = init_raw_params(kp, m, n)
    params = pack_params(raw, m, n)

    scores, preds = jax.jit(fc_forward)(x, params)
    scores, preds = jax.block_until_ready((scores, preds))

    assert scores.shape == (B, 2, 3) and scores.dtype == jnp.float32
    assert preds.shape == (B, 3) and preds.dtype == jnp.int32

    ref_scores, ref_preds = fc_forward_ref(x, raw)
    assert jnp.allclose(scores, ref_scores, atol=1e-5, rtol=1e-5), "scores mismatch"
    assert jnp.array_equal(preds, ref_preds), "preds mismatch"
    print("KERNEL_OK")
</pallas_src>

<mosaic_0001>
module attributes {stable_mosaic.version = 11 : i64} {
  func.func @_fc_fused_kernel(%arg0: memref<2x96xf32, #tpu.memory_space<vmem>>, %arg1: memref<96x32xf32, #tpu.memory_space<vmem>>, %arg2: memref<1x32xf32, #tpu.memory_space<vmem>>, %arg3: memref<32x64xf32, #tpu.memory_space<vmem>>, %arg4: memref<1x64xf32, #tpu.memory_space<vmem>>, %arg5: memref<64x32xf32, #tpu.memory_space<vmem>>, %arg6: memref<1x32xf32, #tpu.memory_space<vmem>>, %arg7: memref<32x32xf32, #tpu.memory_space<vmem>>, %arg8: memref<1x32xf32, #tpu.memory_space<vmem>>, %arg9: memref<64x6xf32, #tpu.memory_space<vmem>>, %arg10: memref<32x6xf32, #tpu.memory_space<vmem>>, %arg11: memref<32x6xf32, #tpu.memory_space<vmem>>, %arg12: memref<1x6xf32, #tpu.memory_space<vmem>>, %arg13: memref<2x6xf32, #tpu.memory_space<vmem>>, %arg14: memref<2x3xi32, #tpu.memory_space<vmem>>) attributes {dimension_semantics = [], scalar_prefetch = 0 : i64, scratch_operands = 0 : i64, tpu.core_type = #tpu.core_type<tc>} {
    %c0 = arith.constant 0 : index
    %c0_0 = arith.constant 0 : index
    %0 = vector.load %arg0[%c0, %c0_0] : memref<2x96xf32, #tpu.memory_space<vmem>>, vector<2x96xf32>
    %c0_1 = arith.constant 0 : index
    %c0_2 = arith.constant 0 : index
    %1 = vector.load %arg1[%c0_1, %c0_2] : memref<96x32xf32, #tpu.memory_space<vmem>>, vector<96x32xf32>
    %cst = arith.constant dense<0.000000e+00> : vector<2x32xf32>
    %2 = tpu.matmul %0, %1, %cst {dimension_numbers = #tpu.dot_dimension_numbers<[1], [0], [0], [1], [0, 0, 1, 1], [], []>} : vector<2x96xf32>, vector<96x32xf32>, vector<2x32xf32> -> vector<2x32xf32>
    %c0_3 = arith.constant 0 : index
    %c0_4 = arith.constant 0 : index
    %3 = vector.load %arg2[%c0_3, %c0_4] : memref<1x32xf32, #tpu.memory_space<vmem>>, vector<1x32xf32>
    %4 = vector.broadcast %3 : vector<1x32xf32> to vector<2x32xf32>
    %5 = arith.addf %2, %4 : vector<2x32xf32>
    %cst_5 = arith.constant 0.000000e+00 : f32
    %6 = vector.broadcast %cst_5 : f32 to vector<2x32xf32>
    %7 = arith.maximumf %5, %6 : vector<2x32xf32>
    %c0_6 = arith.constant 0 : index
    %c0_7 = arith.constant 0 : index
    %8 = vector.load %arg3[%c0_6, %c0_7] : memref<32x64xf32, #tpu.memory_space<vmem>>, vector<32x64xf32>
    %cst_8 = arith.constant dense<0.000000e+00> : vector<2x64xf32>
    %9 = tpu.matmul %7, %8, %cst_8 {dimension_numbers = #tpu.dot_dimension_numbers<[1], [0], [0], [1], [0, 0, 1, 1], [], []>} : vector<2x32xf32>, vector<32x64xf32>, vector<2x64xf32> -> vector<2x64xf32>
    %c0_9 = arith.constant 0 : index
    %c0_10 = arith.constant 0 : index
    %10 = vector.load %arg4[%c0_9, %c0_10] : memref<1x64xf32, #tpu.memory_space<vmem>>, vector<1x64xf32>
    %11 = vector.broadcast %10 : vector<1x64xf32> to vector<2x64xf32>
    %12 = arith.addf %9, %11 : vector<2x64xf32>
    %cst_11 = arith.constant 0.000000e+00 : f32
    %13 = vector.broadcast %cst_11 : f32 to vector<2x64xf32>
    %14 = arith.maximumf %12, %13 : vector<2x64xf32>
    %c0_12 = arith.constant 0 : index
    %c0_13 = arith.constant 0 : index
    %15 = vector.load %arg5[%c0_12, %c0_13] : memref<64x32xf32, #tpu.memory_space<vmem>>, vector<64x32xf32>
    %cst_14 = arith.constant dense<0.000000e+00> : vector<2x32xf32>
    %16 = tpu.matmul %14, %15, %cst_14 {dimension_numbers = #tpu.dot_dimension_numbers<[1], [0], [0], [1], [0, 0, 1, 1], [], []>} : vector<2x64xf32>, vector<64x32xf32>, vector<2x32xf32> -> vector<2x32xf32>
    %c0_15 = arith.constant 0 : index
    %c0_16 = arith.constant 0 : index
    %17 = vector.load %arg6[%c0_15, %c0_16] : memref<1x32xf32, #tpu.memory_space<vmem>>, vector<1x32xf32>
    %18 = vector.broadcast %17 : vector<1x32xf32> to vector<2x32xf32>
    %19 = arith.addf %16, %18 : vector<2x32xf32>
    %cst_17 = arith.constant 0.000000e+00 : f32
    %20 = vector.broadcast %cst_17 : f32 to vector<2x32xf32>
    %21 = arith.maximumf %19, %20 : vector<2x32xf32>
    %c0_18 = arith.constant 0 : index
    %c0_19 = arith.constant 0 : index
    %22 = vector.load %arg7[%c0_18, %c0_19] : memref<32x32xf32, #tpu.memory_space<vmem>>, vector<32x32xf32>
    %cst_20 = arith.constant dense<0.000000e+00> : vector<2x32xf32>
    %23 = tpu.matmul %21, %22, %cst_20 {dimension_numbers = #tpu.dot_dimension_numbers<[1], [0], [0], [1], [0, 0, 1, 1], [], []>} : vector<2x32xf32>, vector<32x32xf32>, vector<2x32xf32> -> vector<2x32xf32>
    %c0_21 = arith.constant 0 : index
    %c0_22 = arith.constant 0 : index
    %24 = vector.load %arg8[%c0_21, %c0_22] : memref<1x32xf32, #tpu.memory_space<vmem>>, vector<1x32xf32>
    %25 = vector.broadcast %24 : vector<1x32xf32> to vector<2x32xf32>
    %26 = arith.addf %23, %25 : vector<2x32xf32>
    %cst_23 = arith.constant 0.000000e+00 : f32
    %27 = vector.broadcast %cst_23 : f32 to vector<2x32xf32>
    %28 = arith.maximumf %26, %27 : vector<2x32xf32>
    %c0_24 = arith.constant 0 : index
    %c0_25 = arith.constant 0 : index
    %29 = vector.load %arg9[%c0_24, %c0_25] : memref<64x6xf32, #tpu.memory_space<vmem>>, vector<64x6xf32>
    %cst_26 = arith.constant dense<0.000000e+00> : vector<2x6xf32>
    %30 = tpu.matmul %14, %29, %cst_26 {dimension_numbers = #tpu.dot_dimension_numbers<[1], [0], [0], [1], [0, 0, 1, 1], [], []>} : vector<2x64xf32>, vector<64x6xf32>, vector<2x6xf32> -> vector<2x6xf32>
    %c0_27 = arith.constant 0 : index
    %c0_28 = arith.constant 0 : index
    %31 = vector.load %arg10[%c0_27, %c0_28] : memref<32x6xf32, #tpu.memory_space<vmem>>, vector<32x6xf32>
    %cst_29 = arith.constant dense<0.000000e+00> : vector<2x6xf32>
    %32 = tpu.matmul %21, %31, %cst_29 {dimension_numbers = #tpu.dot_dimension_numbers<[1], [0], [0], [1], [0, 0, 1, 1], [], []>} : vector<2x32xf32>, vector<32x6xf32>, vector<2x6xf32> -> vector<2x6xf32>
    %33 = arith.addf %30, %32 : vector<2x6xf32>
    %c0_30 = arith.constant 0 : index
    %c0_31 = arith.constant 0 : index
    %34 = vector.load %arg11[%c0_30, %c0_31] : memref<32x6xf32, #tpu.memory_space<vmem>>, vector<32x6xf32>
    %cst_32 = arith.constant dense<0.000000e+00> : vector<2x6xf32>
    %35 = tpu.matmul %28, %34, %cst_32 {dimension_numbers = #tpu.dot_dimension_numbers<[1], [0], [0], [1], [0, 0, 1, 1], [], []>} : vector<2x32xf32>, vector<32x6xf32>, vector<2x6xf32> -> vector<2x6xf32>
    %36 = arith.addf %33, %35 : vector<2x6xf32>
    %c0_33 = arith.constant 0 : index
    %c0_34 = arith.constant 0 : index
    %37 = vector.load %arg12[%c0_33, %c0_34] : memref<1x6xf32, #tpu.memory_space<vmem>>, vector<1x6xf32>
    %38 = vector.broadcast %37 : vector<1x6xf32> to vector<2x6xf32>
    %39 = arith.addf %36, %38 : vector<2x6xf32>
    %c0_35 = arith.constant 0 : index
    %c0_36 = arith.constant 0 : index
    %40 = vector.load %arg13[%c0_35, %c0_36] : memref<2x6xf32, #tpu.memory_space<vmem>>, vector<2x6xf32>
    tpu.vector_store %arg13[%c0_35, %c0_36], %39 {strides = array<i32>} : memref<2x6xf32, #tpu.memory_space<vmem>>, vector<2x6xf32>,
    %41 = vector.extract_strided_slice %39 {offsets = [0, 3], sizes = [2, 3], strides = [1, 1]} : vector<2x6xf32> to vector<2x3xf32>
    %42 = vector.extract_strided_slice %39 {offsets = [0, 0], sizes = [2, 3], strides = [1, 1]} : vector<2x6xf32> to vector<2x3xf32>
    %43 = arith.cmpf ogt, %41, %42 : vector<2x3xf32>
    %44 = arith.extui %43 : vector<2x3xi1> to vector<2x3xi32>
    %c0_37 = arith.constant 0 : index
    %c0_38 = arith.constant 0 : index
    %45 = vector.load %arg14[%c0_37, %c0_38] : memref<2x3xi32, #tpu.memory_space<vmem>>, vector<2x3xi32>
    tpu.vector_store %arg14[%c0_37, %c0_38], %44 {strides = array<i32>} : memref<2x3xi32, #tpu.memory_space<vmem>>, vector<2x3xi32>,
    return
  }
}

</mosaic_0001>

<bundles_post_ra>
// kernel: fc_forward.1
= control target key start
LH: loop header
LB: loop body
LE: loop exit
PB: predicated region body
PF: predicated region fallthrough
CT: control target
= control target key end

     0   :  { %v940_v3 = vmov 0.0|0.0   ;;  %vm941_vm0 = vmmov 0   ;;  %v942_v6 = vmov 0.0   ;;  %s1229_s0 = inlined_call_operand.vmem [shape: f32[2,96], index: 0, kind: input, shape index: {}]   ;;  %s1230_s1 = inlined_call_operand.vmem [shape: f32[96,32], index: 1, kind: input, shape index: {}]   ;;  %s1231_s2 = inlined_call_operand.vmem [shape: f32[1,32], index: 2, kind: input, shape index: {}]   ;;  %s1232_s3 = inlined_call_operand.vmem [shape: f32[32,64], index: 3, kind: input, shape index: {}]   ;;  %s1233_s4 = inlined_call_operand.vmem [shape: f32[1,64], index: 4, kind: input, shape index: {}]   ;;  %s1234_s5 = inlined_call_operand.vmem [shape: f32[64,32], index: 5, kind: input, shape index: {}]   ;;  %s1235_s6 = inlined_call_operand.vmem [shape: f32[1,32], index: 6, kind: input, shape index: {}]   ;;  %s1236_s7 = inlined_call_operand.vmem [shape: f32[32,32], index: 7, kind: input, shape index: {}]   ;;  %s1237_s8 = inlined_call_operand.vmem [shape: f32[1,32], index: 8, kind: input, shape index: {}]   ;;  %s1238_s9 = inlined_call_operand.vmem [shape: f32[64,6], index: 9, kind: input, shape index: {}]   ;;  %s1239_s10 = inlined_call_operand.vmem [shape: f32[32,6], index: 10, kind: input, shape index: {}]   ;;  %s1240_s11 = inlined_call_operand.vmem [shape: f32[32,6], index: 11, kind: input, shape index: {}]   ;;  %s1241_s12 = inlined_call_operand.vmem [shape: f32[1,6], index: 12, kind: input, shape index: {}]   ;;  %s1242_s13 = inlined_call_operand.vmem [shape: f32[2,6], index: 13, kind: output, shape index: {0}]   ;;  %s1243_s14 = inlined_call_operand.hbm [shape: s32[2,3], index: 14, kind: output, shape index: {1}]  }
   0x1   :  { %v48_v0 = vld [vmem:[%s1230_s1] sm:$0xff]  ;;  %v49_v1 = vld [vmem:[%s1230_s1 + $0x8] sm:$0xff]  ;;  %v50_v2 = vld [vmem:[%s1230_s1 + $0x10] sm:$0xff]  ;;  %843 = vmatprep.subr.bf16.mxu0 %v940_v3  ;;  %758 = vmatprep.mubr.msk.f32.mxu0 %vm941_vm0, %v942_v6 }
   0x2   :  { %v844_v4 = vpack.c.bf16 %v49_v1, %v48_v0  ;;  %v51_v5 = vld [vmem:[%s1230_s1 + $0x18] sm:$0xff]  ;;  %861 = vmatprep.subr.bf16.mxu1 %v940_v3  ;;  %769 = vmatprep.mubr.msk.f32.mxu1 %vm941_vm0, %v942_v6  ;;  %v52_v8 = vld [vmem:[%s1230_s1 + $0x20] sm:$0xff]  ;;  %v53_v9 = vld [vmem:[%s1230_s1 + $0x28] sm:$0xff] }
   0x3   :  { %v847_v7 = vpack.c.bf16 %v51_v5, %v50_v2  ;;  %v142_v10 = vld [vmem:[%s1232_s3] sm:$0xff]  ;;  %v143_v11 = vld [vmem:[%s1232_s3 + $0x8] sm:$0xff] }
   0x4   :  { %845 = vmatpush3.bf16.msra.mxu0 %v844_v4  ;;  %v862_v12 = vpack.c.bf16 %v143_v11, %v142_v10 }
   0x5   :  { %846 = vmatprep.subr.bf16.mxu0 %v940_v3 }
   0x6   :  { %20 = vsyncpa [#allocation3], 0  ;;  %v850_v13 = vpack.c.bf16 %v53_v9, %v52_v8  ;;  %863 = vmatpush3.bf16.msra.mxu1 %v862_v12  ;;  %v54_v14 = vld [vmem:[%s1230_s1 + $0x30] sm:$0xff]  ;;  %v55_v15 = vld [vmem:[%s1230_s1 + $0x38] sm:$0xff]  ;;  %vm67_vm1 = vcmask 785408   ;;  %vm153_vm2 = vcmask 261120  }
   0x7   :  { %864 = vmatprep.subr.bf16.mxu1 %v940_v3  ;;  %v853_v16 = vpack.c.bf16 %v55_v15, %v54_v14  ;;  %v56_v17 = vld [vmem:[%s1230_s1 + $0x40] sm:$0xff]  ;;  %v57_v18 = vld [vmem:[%s1230_s1 + $0x48] sm:$0xff]  ;;  %v58_v20 = vld [vmem:[%s1230_s1 + $0x50] sm:$0xff]  ;;  %vm243_vm3 = vcmask 523264   ;;  %vm641_vm4 = vcmask 41984   ;;  %s943_s28 = smov 3  }
   0x8   :  { %848 = vmatpush3.bf16.msra.mxu0 %v847_v7  ;;  %v856_v19 = vpack.c.bf16 %v57_v18, %v56_v17  ;;  %v59_v21 = vld [vmem:[%s1230_s1 + $0x58] sm:$0xff]  ;;  %v47_v23 = vld [vmem:[%s1229_s0] sm:$0x3]  ;;  %v144_v24 = vld [vmem:[%s1232_s3 + $0x10] sm:$0xff]  ;;  %s945_s1 = smov 125   ;;  %vm651_vm6 = vcmask 17408  }
   0x9   :  { %849 = vmatprep.subr.bf16.mxu0 %v940_v3  ;;  %v859_v22 = vpack.c.bf16 %v59_v21, %v58_v20  ;;  %v145_v25 = vld [vmem:[%s1232_s3 + $0x18] sm:$0xff]  ;;  %v671_v27 = vld [vmem:[%s1231_s2] ss:$0 sm:$0xff]  ;;  %v229_v29 = vld [vmem:[%s1234_s5 + $0x8] sm:$0xff] }
   0xa   :  { %v865_v26 = vpack.c.bf16 %v145_v25, %v144_v24  ;;  %v228_v28 = vld [vmem:[%s1234_s5] sm:$0xff]  ;;  %v230_v35 = vld [vmem:[%s1234_s5 + $0x10] sm:$0xff]  ;;  %v231_v36 = vld [vmem:[%s1234_s5 + $0x18] sm:$0xff] }
   0xb   :  { %v868_v33 = vpack.c.bf16 %v229_v29, %v228_v28  ;;  %v871_v37 = vpack.c.bf16 %v231_v36, %v230_v35  ;;  %v232_v38 = vld [vmem:[%s1234_s5 + $0x20] sm:$0xff]  ;;  %v233_v39 = vld [vmem:[%s1234_s5 + $0x28] sm:$0xff]  ;;  %v234_v41 = vld [vmem:[%s1234_s5 + $0x30] sm:$0xff]  ;;  %v944_v36 = vmov 0  }
   0xc   :  { %851 = vmatpush3.bf16.msra.mxu0 %v850_v13  ;;  %866 = vmatpush3.bf16.msra.mxu1 %v865_v26  ;;  %v874_v40 = vpack.c.bf16 %v233_v39, %v232_v38  ;;  %v235_v42 = vld [vmem:[%s1234_s5 + $0x38] sm:$0xff]  ;;  %v318_v44 = vld [vmem:[%s1236_s7] sm:$0xff]  ;;  %v319_v45 = vld [vmem:[%s1236_s7 + $0x8] sm:$0xff] }
   0xd   :  { %852 = vmatprep.subr.bf16.mxu0 %v940_v3  ;;  %867 = vmatprep.subr.bf16.mxu1 %v940_v3  ;;  %v877_v43 = vpack.c.bf16 %v235_v42, %v234_v41  ;;  %v880_v46 = vpack.c.bf16 %v319_v45, %v318_v44  ;;  %v673_v47 = vld [vmem:[%s1233_s4] ss:$0 sm:$0xff]  ;;  %v412_v49 = vld [vmem:[%s1239_s10 + $0x8] sm:$0xff]  ;;  %v320_v55 = vld [vmem:[%s1236_s7 + $0x10] sm:$0xff] }
   0xe   :  { %v411_v48 = vld [vmem:[%s1239_s10] sm:$0xff]  ;;  %v321_v56 = vld [vmem:[%s1236_s7 + $0x18] sm:$0xff]  ;;  %v413_v58 = vld [vmem:[%s1239_s10 + $0x10] sm:$0xff] }
   0xf   :  { %v886_v53 = vpack.c.bf16 %v412_v49, %v411_v48  ;;  %v883_v57 = vpack.c.bf16 %v321_v56, %v320_v55  ;;  %v414_v59 = vld [vmem:[%s1239_s10 + $0x18] sm:$0xff]  ;;  %v675_v61 = vld [vmem:[%s1235_s6] ss:$0 sm:$0xff]  ;;  %v404_v63 = vld [vmem:[%s1238_s9 + $0x8] sm:$0xff]  ;;  %s946_s10 = smov [#allocation2]  }
  0x10   :  { %854 = vmatpush3.bf16.msra.mxu0 %v853_v16  ;;  %v889_v60 = vpack.c.bf16 %v414_v59, %v413_v58  ;;  %v403_v62 = vld [vmem:[%s1238_s9] sm:$0xff]  ;;  %v556_v2 = vld [vmem:[%s1240_s11 + $0x8] sm:$0xff]  ;;  %v405_v9 = vld [vmem:[%s1238_s9 + $0x10] sm:$0xff]  ;;  %s661_s29 = sshll.u32 %s946_s10, 4  ;;  %s662_s29 = int_to_ptr.vmem [resolvable:$true] %s661_s29 }
  0x11   :  { %855 = vmatprep.subr.bf16.mxu0 %v940_v3  ;;  %v555_v1 = vld [vmem:[%s1240_s11] sm:$0xff]  ;;  %v892_v7 = vpack.c.bf16 %v404_v63, %v403_v62  ;;  %v406_v10 = vld [vmem:[%s1238_s9 + $0x18] sm:$0xff]  ;;  %v408_v14 = vld [vmem:[%s1238_s9 + $0x28] sm:$0xff]  ;;  %p921_p1 = scmp.lt.s32.totalorder %s662_s29, %s662_s29 }
  0x12   :  { %v904_v11 = vpack.c.bf16 %v556_v2, %v555_v1  ;;  %v895_v12 = vpack.c.bf16 %v406_v10, %v405_v9  ;;  %v407_v13 = vld [vmem:[%s1238_s9 + $0x20] sm:$0xff]  ;;  %v409_v16 = vld [vmem:[%s1238_s9 + $0x30] sm:$0xff]  ;;  %v410_v17 = vld [vmem:[%s1238_s9 + $0x38] sm:$0xff] }
  0x13   :  { %v898_v15 = vpack.c.bf16 %v408_v14, %v407_v13  ;;  %v901_v18 = vpack.c.bf16 %v410_v17, %v409_v16  ;;  %v677_v21 = vld [vmem:[%s1237_s8] ss:$0 sm:$0xff] }
  0x14   :  { %857 = vmatpush3.bf16.msra.mxu0 %v856_v19  ;;  %v558_v19 = vld [vmem:[%s1240_s11 + $0x18] sm:$0xff] }
  0x15   :  { %858 = vmatprep.subr.bf16.mxu0 %v940_v3 }
  0x18   :  { %860 = vmatpush3.bf16.msra.mxu0 %v859_v22 }
  0x19   :  { %879 = vmatprep.subr.bf16.mxu0 %v940_v3 }
  0x1b   :  { %759 = vmatmul.mubr.msk.f32.vlgmr.msra.gmra.mrb[0].mxu0 %vm67_vm1, %v47_v23 }
  0x1c   :  { %799 = vmatprep.mubr.msk.f32.mxu0 %vm941_vm0, %v942_v6  ;;  %881 = vmatpush3.bf16.msra.mxu0 %v880_v46 }
  0x1d   :  { %882 = vmatprep.subr.bf16.mxu0 %v940_v3 }
  0x20   :  { %884 = vmatpush3.bf16.msra.mxu0 %v883_v57 }
  0x21   :  { %891 = vmatprep.subr.bf16.mxu0 %v940_v3 }
  0xee   :  { %v137_v30 = vpop.f32.mrb[0].mxu0 }
  0xef   :  { %v138_v31 = vadd.f32 %v671_v27, %v137_v30  ;;  %v760_v32 = vpop.f32.mrb[1].mxu0 }
  0xf1   :  { %v141_v34 = vmax.f32 %v138_v31, 0.0  ;;  %v682_v31 = vld [vmem:[%s1241_s12] ss:$0 sm:$0xff]  ;;  %s916_s12 = scalar_lea.vmem %s662_s29, 32 }
  0xf2   :  { %p917_p0 = scmp.ne.s32.totalorder %s662_s29, %s916_s12  ;;  %p922_p2 = scmp.lt.s32.totalorder %s916_s12, %s916_s12 }
  0xf3   :  { %770 = vmatmul.mubr.msk.f32.vlgmr.msra.gmra.mrb[0].mxu1 %vm153_vm2, %v141_v34 }
  0xf4   :  { %869 = vmatpush3.bf16.msra.mxu1 %v868_v33  ;;  %788 = vmatprep.mubr.msk.f32.mxu1 %vm941_vm0, %v942_v6  ;;  %p923_p3 = por %p922_p2, %p921_p1 }
  0xf5   :  { %870 = vmatprep.subr.bf16.mxu1 %v940_v3 }
  0xf6   :  { %p924_p4 = pnand %p923_p3, %p917_p0 }
  0xf8   :  { %872 = vmatpush3.bf16.msra.mxu1 %v871_v37 }
  0xf9   :  { %873 = vmatprep.subr.bf16.mxu1 %v940_v3 }
  0xfc   :  { %875 = vmatpush3.bf16.msra.mxu1 %v874_v40 }
  0xfd   :  { %876 = vmatprep.subr.bf16.mxu1 %v940_v3 }
 0x100   :  { %878 = vmatpush3.bf16.msra.mxu1 %v877_v43 }
 0x101   :  { %885 = vmatprep.subr.bf16.mxu1 %v940_v3 }
 0x1c6   :  { %v223_v50 = vpop.f32.mrb[0].mxu1 }
 0x1c7   :  { %v224_v51 = vadd.f32 %v673_v47, %v223_v50  ;;  %v771_v52 = vpop.f32.mrb[1].mxu1 }
 0x1c9   :  { %v227_v54 = vmax.f32 %v224_v51, 0.0 }
 0x1cb   :  { %789 = vmatmul.mubr.msk.f32.vlgmr.msra.gmra.mrb[2].mxu1 %vm243_vm3, %v227_v54 }
 0x1cc   :  { %887 = vmatpush3.bf16.msra.mxu1 %v886_v53  ;;  %810 = vmatprep.mubr.msk.f32.mxu1 %vm941_vm0, %v942_v6 }
 0x1cd   :  { %888 = vmatprep.subr.bf16.mxu1 %v940_v3 }
 0x1d0   :  { %890 = vmatpush3.bf16.msra.mxu1 %v889_v60 }
 0x1d1   :  { %903 = vmatprep.subr.bf16.mxu1 %v940_v3 }
 0x29e   :  { %v313_v0 = vpop.f32.mrb[2].mxu1 }
 0x29f   :  { %v314_v4 = vadd.f32 %v675_v61, %v313_v0  ;;  %v790_v5 = vpop.f32.mrb[3].mxu1 }
 0x2a1   :  { %v317_v8 = vmax.f32 %v314_v4, 0.0 }
 0x2a3   :  { %800 = vmatmul.mubr.msk.f32.vlgmr.msra.gmra.mrb[2].mxu0 %vm153_vm2, %v317_v8  ;;  %811 = vmatmul.mubr.msk.f32.vlgmr.msra.gmra.mrb[4].mxu1 %vm153_vm2, %v317_v8 }
 0x2a4   :  { %893 = vmatpush3.bf16.msra.mxu0 %v892_v7  ;;  %829 = vmatprep.mubr.msk.f32.mxu0 %vm941_vm0, %v942_v6 }
 0x2a5   :  { %894 = vmatprep.subr.bf16.mxu0 %v940_v3  ;;  %905 = vmatpush3.bf16.msra.mxu1 %v904_v11 }
 0x2a6   :  { %906 = vmatprep.subr.bf16.mxu1 %v940_v3  ;;  %840 = vmatprep.mubr.msk.f32.mxu1 %vm941_vm0, %v942_v6  ;;  %v557_v6 = vld [vmem:[%s1240_s11 + $0x10] sm:$0xff] }
 0x2a7   :  { %v907_v20 = vpack.c.bf16 %v558_v19, %v557_v6 }
 0x2a8   :  { %896 = vmatpush3.bf16.msra.mxu0 %v895_v12 }
 0x2a9   :  { %897 = vmatprep.subr.bf16.mxu0 %v940_v3  ;;  %908 = vmatpush3.bf16.msra.mxu1 %v907_v20 }
 0x2ac   :  { %899 = vmatpush3.bf16.msra.mxu0 %v898_v15 }
 0x2ad   :  { %900 = vmatprep.subr.bf16.mxu0 %v940_v3 }
 0x2b0   :  { %902 = vmatpush3.bf16.msra.mxu0 %v901_v18 }
 0x2b3   :  { %830 = vmatmul.mubr.msk.f32.vlgmr.msra.gmra.mrb[4].mxu0 %vm243_vm3, %v227_v54 }
 0x376   :  { %v398_v22 = vpop.f32.mrb[2].mxu0  ;;  %v481_v23 = vpop.f32.mrb[4].mxu1 }
 0x377   :  { %v399_v3 = vadd.f32 %v677_v21, %v398_v22  ;;  %v801_v24 = vpop.f32.mrb[3].mxu0  ;;  %v812_v25 = vpop.f32.mrb[5].mxu1 }
 0x379   :  { %v402_v26 = vmax.f32 %v399_v3, 0.0 }
 0x37b   :  { %841 = vmatmul.mubr.msk.f32.vlgmr.msra.gmra.mrb[6].mxu1 %vm153_vm2, %v402_v26 }
 0x386   :  { %v551_v27 = vpop.f32.mrb[4].mxu0 }
 0x387   :  { %v552_v28 = vadd.f32 %v551_v27, %v481_v23  ;;  %v831_v29 = vpop.f32.mrb[5].mxu0 }
 0x44e   :  { %v628_v30 = vpop.f32.mrb[6].mxu1 }
 0x44f   :  { %v632_v32 = vadd.f32 %v628_v30, %v552_v28  ;;  %v842_v33 = vpop.f32.mrb[7].mxu1 }
 0x451   :  { %v640_v34 = vadd.f32 %v682_v31, %v632_v32 }
 0x453   :  { %642 = vst.msk [vmem:[%s1242_s13] sm:$0x3] %vm641_vm4, %v640_v34  ;;  %644 = vrot.lane.b32.xlu0 %v640_v34, %s943_s28 }
 0x4c5   :  { %v645_v35 = vpop.permute.xlu0 %644 }
 0x4c6   :  { %vm647_vm5 = vcmp.gt.f32.partialorder %v640_v34, %v645_v35 }
 0x4c7   :  { %v648_v37 = vsel %vm647_vm5, 1, %v944_v36 }
 0x4c8   :  { %649 = vrot.lane.b32.xlu0 %v648_v37, %s945_s1 }
 0x53a   :  { %v650_v38 = vpop.permute.xlu0 %649 }
 0x53b   :  { %652 = vst.msk [vmem:[#allocation2] sm:$0x3] %vm651_vm6, %v650_v38 }
 0x53c   :  { %927 = shalt.err (!%p924_p4)
}
 0x53d   :  { %s928_s30 = scalar_lea.hbm %s1243_s14, 32 }
 0x53e   :  { %p929_p5 = scmp.ne.s32.totalorder %s1243_s14, %s928_s30  ;;  %p932_p6 = scmp.lt.u32.totalorder %s928_s30, %s1243_s14 }
 0x540   :  { %p934_p7 = pnand %p932_p6, %p929_p5 }
 0x542   :  { %937 = shalt.err (!%p934_p7)
}
 0x543   :  { %664 = dma.vmem_to_hbm [thread:$0]  %s662_s29, 32, %s1243_s14, [#allocation3]  }
 0x544   :  { %938 = dma.done.wait [#allocation3], 32  }
 0x545   :  { %939 = vsyncadd [#allocation3], 4294967264 }
 0x546   :  { %670 = vsyncpa [#allocation3], 1 }

</bundles_post_ra>
